<compile_context>
chip_gen: v5e
topology: v5e:2x2
jax: 0.10.0
libtpu: 0.0.40
codegen_flags: <defaults>
</compile_context>

<pallas_src>
import jax
import jax.numpy as jnp
from jax.experimental import pallas as pl
from jax.experimental.pallas import tpu as pltpu

NDIMS = 17
K_PAD = 32          # sublane-aligned padding of the input feature dim
HIDDEN = 128
BN_EPS = 1e-5


def _discriminator_kernel(x_ref, w1_ref, w2_ref, p_ref, o_ref):
    x = x_ref[...]                      # (B, K_PAD) f32
    B = x.shape[0]
    inv_b = jnp.float32(1.0 / B)

    p = p_ref[...]                      # (8, 128) packed small params
    g1, be1 = p[0:1, :], p[1:2, :]
    g2, be2 = p[2:3, :], p[3:4, :]
    w3 = p[4:5, :]                      # (1, 128) final-layer weight row
    b3 = p[5:6, 0:1]                    # (1, 1) final-layer bias

    def bn_relu(h, g, be):
        # Fused single-pass batch statistics; sum and sum-of-squares are
        # independent and interleave with the preceding matmul drain.
        s = jnp.sum(h, axis=0, keepdims=True)           # (1, 128)
        sq = jnp.sum(h * h, axis=0, keepdims=True)      # (1, 128)
        mean = s * inv_b
        var = jnp.maximum(sq * inv_b - mean * mean, 0.0)    # guard tiny negatives
        # Fold the affine into per-feature scale/shift (row-level precompute).
        scale = g * jax.lax.rsqrt(var + BN_EPS)
        shift = be - mean * scale
        return jnp.maximum(h * scale + shift, 0.0)      # BN + ReLU, 2 VALU ops/elt

    # ---- Linear(ndims, 128) [bias cancels in BN] + BatchNorm + ReLU ----
    h = jnp.dot(x, w1_ref[...], preferred_element_type=jnp.float32)
    h = bn_relu(h, g1, be1)

    # ---- Linear(128, 128) [bias cancels in BN] + BatchNorm + ReLU ----
    h = jnp.dot(h, w2_ref[...], preferred_element_type=jnp.float32)
    h = bn_relu(h, g2, be2)

    # ---- Linear(128, 1): (1,128) x (B,128) contracted on last dims -> (1,B).
    # Produces the lane-dense output row directly on the (idle) MXU; no
    # explicit transpose, no O(B^2) temporary.
    z = jax.lax.dot_general(w3, h, (((1,), (1,)), ((), ())),
                            preferred_element_type=jnp.float32)
    z = z + b3                                           # (1,1) -> (1,B)

    # ---- Sigmoid: exp and reciprocal both go to the EUP slot ----
    o_ref[...] = pl.reciprocal(1.0 + jnp.exp(-z), approx=True)


def _vmem_limit_bytes(batch):
    # Residents: x tile + ~3 live (B,128) f32 activations, the two weight
    # tiles + packed params, and the (1,B) output.  2x headroom covers the
    # double-buffered input copies Pallas allocates.
    act = 4 * batch * (K_PAD + 3 * HIDDEN)
    wts = 4 * (K_PAD * HIDDEN + HIDDEN * HIDDEN + 8 * HIDDEN)
    out = 4 * max(batch, HIDDEN)
    est = 2 * (act + wts) + out
    # 32 MiB cap is safe on every generation's scoped-VMEM default
    # (v5e: 16 MiB default / 128 MiB phys; v6e: 32/128; v7x: 32/64).
    return int(min(max(est, 1 << 20), 32 << 20))


def discriminator_forward(x, params):
    """x: (B, NDIMS) float32 -> (B,) float32 (training-mode BatchNorm)."""
    B = x.shape[0]

    # Zero-pad the feature dim to a sublane-aligned K for x and w1.
    xp = jnp.zeros((B, K_PAD), jnp.float32).at[:, :NDIMS].set(x)
    w1p = jnp.zeros((K_PAD, HIDDEN), jnp.float32).at[:NDIMS, :].set(params["w1"])

    # Pack all small per-feature parameters into one (8,128) array -> 1 DMA.
    # (b1/b2 are intentionally omitted: they cancel in training-mode BN.)
    packed = jnp.zeros((8, HIDDEN), jnp.float32)
    packed = packed.at[0].set(params["g1"][0])
    packed = packed.at[1].set(params["be1"][0])
    packed = packed.at[2].set(params["g2"][0])
    packed = packed.at[3].set(params["be2"][0])
    packed = packed.at[4].set(params["w3"][0])
    packed = packed.at[5].set(jnp.full((HIDDEN,), params["b3"][0, 0], jnp.float32))

    vmem = pl.BlockSpec(memory_space=pltpu.MemorySpace.VMEM)
    out_row = pl.pallas_call(
        _discriminator_kernel,
        out_shape=jax.ShapeDtypeStruct((1, B), jnp.float32),
        in_specs=[vmem, vmem, vmem, vmem],
        out_specs=vmem,
        compiler_params=pltpu.CompilerParams(
            vmem_limit_bytes=_vmem_limit_bytes(B)),
    )(xp, w1p, params["w2"], packed)
    # (1, B) lane-dense row -> (B,), matching .view(-1, 1).squeeze(1).
    return out_row.reshape(-1)


def init_params(key):
    """Deterministic parameter init; shapes mirror the PyTorch module.

    PyTorch Linear weight is (out, in); here w1/w2 are stored transposed as
    (in, out), and the final layer weight is kept as a (1, 128) row.  BN
    gamma/beta are perturbed deterministically so the affine path is
    exercised.  b1/b2 are kept so the reference can verify they cancel.
    """
    keys = jax.random.split(key, 8)

    def lin_init(kw, kb, fan_in, fan_out):
        bound = 1.0 / jnp.sqrt(jnp.float32(fan_in))
        w = jax.random.uniform(kw, (fan_in, fan_out), jnp.float32, -bound, bound)
        b = jax.random.uniform(kb, (1, fan_out), jnp.float32, -bound, bound)
        return w, b

    w1, b1 = lin_init(keys[0], keys[1], NDIMS, HIDDEN)
    w2, b2 = lin_init(keys[2], keys[3], HIDDEN, HIDDEN)
    w3_col, b3 = lin_init(keys[4], keys[5], HIDDEN, 1)   # (128, 1), (1, 1)
    w3 = w3_col.T                                        # (1, 128) row

    g1 = 1.0 + 0.1 * jax.random.normal(keys[6], (1, HIDDEN), jnp.float32)
    be1 = 0.1 * jax.random.normal(keys[7], (1, HIDDEN), jnp.float32)
    g2 = jnp.ones((1, HIDDEN), jnp.float32)
    be2 = jnp.zeros((1, HIDDEN), jnp.float32)

    return dict(w1=w1, b1=b1, g1=g1, be1=be1,
                w2=w2, b2=b2, g2=g2, be2=be2,
                w3=w3, b3=b3)


def _reference_forward(x, p):
    """Pure-JAX reference (training-mode BatchNorm, biases kept)."""
    h = x @ p["w1"] + p["b1"]
    m = h.mean(0, keepdims=True)
    v = ((h - m) ** 2).mean(0, keepdims=True)
    h = jnp.maximum((h - m) / jnp.sqrt(v + BN_EPS) * p["g1"] + p["be1"], 0.0)
    h = h @ p["w2"] + p["b2"]
    m = h.mean(0, keepdims=True)
    v = ((h - m) ** 2).mean(0, keepdims=True)
    h = jnp.maximum((h - m) / jnp.sqrt(v + BN_EPS) * p["g2"] + p["be2"], 0.0)
    z = jnp.sum(h * p["w3"], axis=-1) + p["b3"][0, 0]
    return jax.nn.sigmoid(z)                              # (B,)


if __name__ == "__main__":
    key = jax.random.PRNGKey(0)
    k_params, k_x = jax.random.split(key)

    B = 8  # batch size (BatchNorm1d in training mode wants B > 1)
    params = init_params(k_params)
    x = jax.random.normal(k_x, (B, NDIMS), jnp.float32)

    out = jax.block_until_ready(discriminator_forward(x, params))
    ref = _reference_forward(x, params)

    assert out.shape == (B,), out.shape
    # Tolerance accounts for the approximate EUP reciprocal in the sigmoid
    # (~1e-4-level absolute error on outputs in (0, 1)).
    assert jnp.allclose(out, ref, atol=5e-3, rtol=5e-3), (out, ref)

    print("KERNEL_OK")
</pallas_src>

<mosaic_0001>
module attributes {stable_mosaic.version = 11 : i64} {
  func.func @_discriminator_kernel(%arg0: memref<8x32xf32, #tpu.memory_space<vmem>>, %arg1: memref<32x128xf32, #tpu.memory_space<vmem>>, %arg2: memref<128x128xf32, #tpu.memory_space<vmem>>, %arg3: memref<8x128xf32, #tpu.memory_space<vmem>>, %arg4: memref<1x8xf32, #tpu.memory_space<vmem>>) attributes {dimension_semantics = [], scalar_prefetch = 0 : i64, scratch_operands = 0 : i64, tpu.core_type = #tpu.core_type<tc>} {
    %c0 = arith.constant 0 : index
    %c0_0 = arith.constant 0 : index
    %0 = vector.load %arg0[%c0, %c0_0] : memref<8x32xf32, #tpu.memory_space<vmem>>, vector<8x32xf32>
    %c0_1 = arith.constant 0 : index
    %c0_2 = arith.constant 0 : index
    %1 = vector.load %arg3[%c0_1, %c0_2] : memref<8x128xf32, #tpu.memory_space<vmem>>, vector<8x128xf32>
    %2 = vector.extract_strided_slice %1 {offsets = [0, 0], sizes = [1, 128], strides = [1, 1]} : vector<8x128xf32> to vector<1x128xf32>
    %3 = vector.extract_strided_slice %1 {offsets = [1, 0], sizes = [1, 128], strides = [1, 1]} : vector<8x128xf32> to vector<1x128xf32>
    %4 = vector.extract_strided_slice %1 {offsets = [2, 0], sizes = [1, 128], strides = [1, 1]} : vector<8x128xf32> to vector<1x128xf32>
    %5 = vector.extract_strided_slice %1 {offsets = [3, 0], sizes = [1, 128], strides = [1, 1]} : vector<8x128xf32> to vector<1x128xf32>
    %6 = vector.extract_strided_slice %1 {offsets = [4, 0], sizes = [1, 128], strides = [1, 1]} : vector<8x128xf32> to vector<1x128xf32>
    %7 = vector.extract_strided_slice %1 {offsets = [5, 0], sizes = [1, 1], strides = [1, 1]} : vector<8x128xf32> to vector<1x1xf32>
    %c0_3 = arith.constant 0 : index
    %c0_4 = arith.constant 0 : index
    %8 = vector.load %arg1[%c0_3, %c0_4] : memref<32x128xf32, #tpu.memory_space<vmem>>, vector<32x128xf32>
    %cst = arith.constant dense<0.000000e+00> : vector<8x128xf32>
    %9 = tpu.matmul %0, %8, %cst {dimension_numbers = #tpu.dot_dimension_numbers<[1], [0], [0], [1], [0, 0, 1, 1], [], []>} : vector<8x32xf32>, vector<32x128xf32>, vector<8x128xf32> -> vector<8x128xf32>
    %cst_5 = arith.constant dense<0.000000e+00> : vector<128xf32>
    %10 = vector.multi_reduction <add>, %9, %cst_5 [0] : vector<8x128xf32> to vector<128xf32>
    %11 = vector.shape_cast %10 : vector<128xf32> to vector<1x128xf32>
    %12 = arith.mulf %9, %9 : vector<8x128xf32>
    %cst_6 = arith.constant dense<0.000000e+00> : vector<128xf32>
    %13 = vector.multi_reduction <add>, %12, %cst_6 [0] : vector<8x128xf32> to vector<128xf32>
    %14 = vector.shape_cast %13 : vector<128xf32> to vector<1x128xf32>
    %cst_7 = arith.constant 1.250000e-01 : f32
    %15 = vector.broadcast %cst_7 : f32 to vector<1x128xf32>
    %16 = arith.mulf %11, %15 : vector<1x128xf32>
    %cst_8 = arith.constant 1.250000e-01 : f32
    %17 = vector.broadcast %cst_8 : f32 to vector<1x128xf32>
    %18 = arith.mulf %14, %17 : vector<1x128xf32>
    %19 = arith.mulf %16, %16 : vector<1x128xf32>
    %20 = arith.subf %18, %19 : vector<1x128xf32>
    %cst_9 = arith.constant 0.000000e+00 : f32
    %21 = vector.broadcast %cst_9 : f32 to vector<1x128xf32>
    %22 = arith.maximumf %20, %21 : vector<1x128xf32>
    %cst_10 = arith.constant 9.99999974E-6 : f32
    %23 = vector.broadcast %cst_10 : f32 to vector<1x128xf32>
    %24 = arith.addf %22, %23 : vector<1x128xf32>
    %25 = math.rsqrt %24 : vector<1x128xf32>
    %26 = arith.mulf %2, %25 : vector<1x128xf32>
    %27 = arith.mulf %16, %26 : vector<1x128xf32>
    %28 = arith.subf %3, %27 : vector<1x128xf32>
    %29 = vector.broadcast %26 : vector<1x128xf32> to vector<8x128xf32>
    %30 = arith.mulf %9, %29 : vector<8x128xf32>
    %31 = vector.broadcast %28 : vector<1x128xf32> to vector<8x128xf32>
    %32 = arith.addf %30, %31 : vector<8x128xf32>
    %cst_11 = arith.constant 0.000000e+00 : f32
    %33 = vector.broadcast %cst_11 : f32 to vector<8x128xf32>
    %34 = arith.maximumf %32, %33 : vector<8x128xf32>
    %c0_12 = arith.constant 0 : index
    %c0_13 = arith.constant 0 : index
    %35 = vector.load %arg2[%c0_12, %c0_13] : memref<128x128xf32, #tpu.memory_space<vmem>>, vector<128x128xf32>
    %cst_14 = arith.constant dense<0.000000e+00> : vector<8x128xf32>
    %36 = tpu.matmul %34, %35, %cst_14 {dimension_numbers = #tpu.dot_dimension_numbers<[1], [0], [0], [1], [0, 0, 1, 1], [], []>} : vector<8x128xf32>, vector<128x128xf32>, vector<8x128xf32> -> vector<8x128xf32>
    %cst_15 = arith.constant dense<0.000000e+00> : vector<128xf32>
    %37 = vector.multi_reduction <add>, %36, %cst_15 [0] : vector<8x128xf32> to vector<128xf32>
    %38 = vector.shape_cast %37 : vector<128xf32> to vector<1x128xf32>
    %39 = arith.mulf %36, %36 : vector<8x128xf32>
    %cst_16 = arith.constant dense<0.000000e+00> : vector<128xf32>
    %40 = vector.multi_reduction <add>, %39, %cst_16 [0] : vector<8x128xf32> to vector<128xf32>
    %41 = vector.shape_cast %40 : vector<128xf32> to vector<1x128xf32>
    %cst_17 = arith.constant 1.250000e-01 : f32
    %42 = vector.broadcast %cst_17 : f32 to vector<1x128xf32>
    %43 = arith.mulf %38, %42 : vector<1x128xf32>
    %cst_18 = arith.constant 1.250000e-01 : f32
    %44 = vector.broadcast %cst_18 : f32 to vector<1x128xf32>
    %45 = arith.mulf %41, %44 : vector<1x128xf32>
    %46 = arith.mulf %43, %43 : vector<1x128xf32>
    %47 = arith.subf %45, %46 : vector<1x128xf32>
    %cst_19 = arith.constant 0.000000e+00 : f32
    %48 = vector.broadcast %cst_19 : f32 to vector<1x128xf32>
    %49 = arith.maximumf %47, %48 : vector<1x128xf32>
    %cst_20 = arith.constant 9.99999974E-6 : f32
    %50 = vector.broadcast %cst_20 : f32 to vector<1x128xf32>
    %51 = arith.addf %49, %50 : vector<1x128xf32>
    %52 = math.rsqrt %51 : vector<1x128xf32>
    %53 = arith.mulf %4, %52 : vector<1x128xf32>
    %54 = arith.mulf %43, %53 : vector<1x128xf32>
    %55 = arith.subf %5, %54 : vector<1x128xf32>
    %56 = vector.broadcast %53 : vector<1x128xf32> to vector<8x128xf32>
    %57 = arith.mulf %36, %56 : vector<8x128xf32>
    %58 = vector.broadcast %55 : vector<1x128xf32> to vector<8x128xf32>
    %59 = arith.addf %57, %58 : vector<8x128xf32>
    %cst_21 = arith.constant 0.000000e+00 : f32
    %60 = vector.broadcast %cst_21 : f32 to vector<8x128xf32>
    %61 = arith.maximumf %59, %60 : vector<8x128xf32>
    %cst_22 = arith.constant dense<0.000000e+00> : vector<1x8xf32>
    %62 = tpu.matmul %6, %61, %cst_22 {dimension_numbers = #tpu.dot_dimension_numbers<[1], [1], [0], [0], [0, 0, 1, 0], [], []>} : vector<1x128xf32>, vector<8x128xf32>, vector<1x8xf32> -> vector<1x8xf32>
    %63 = vector.broadcast %7 : vector<1x1xf32> to vector<1x8xf32>
    %64 = arith.addf %62, %63 : vector<1x8xf32>
    %cst_23 = arith.constant 0.000000e+00 : f32
    %65 = vector.broadcast %cst_23 : f32 to vector<1x8xf32>
    %66 = arith.subf %65, %64 : vector<1x8xf32>
    %67 = math.exp %66 : vector<1x8xf32>
    %cst_24 = arith.constant 1.000000e+00 : f32
    %68 = vector.broadcast %cst_24 : f32 to vector<1x8xf32>
    %69 = arith.addf %68, %67 : vector<1x8xf32>
    %70 = tpu.reciprocal %69 {approx = true} : vector<1x8xf32> -> vector<1x8xf32>
    %c0_25 = arith.constant 0 : index
    %c0_26 = arith.constant 0 : index
    %71 = vector.load %arg4[%c0_25, %c0_26] : memref<1x8xf32, #tpu.memory_space<vmem>>, vector<1x8xf32>
    tpu.vector_store %arg4[%c0_25, %c0_26], %70 {strides = array<i32>} : memref<1x8xf32, #tpu.memory_space<vmem>>, vector<1x8xf32>,
    return
  }
}

</mosaic_0001>

<bundles_post_ra>
// kernel: tpu_custom_call.1
= control target key start
LH: loop header
LB: loop body
LE: loop exit
PB: predicated region body
PF: predicated region fallthrough
CT: control target
= control target key end

     0   :  { %9 = vsyncpa [#allocation3], 0  ;;  %s471_s0 = inlined_call_operand.hbm [shape: f32[8,32], index: 0, kind: input, shape index: {}]   ;;  %s472_s1 = inlined_call_operand.hbm [shape: f32[32,128], index: 1, kind: input, shape index: {}]   ;;  %s473_s2 = inlined_call_operand.hbm [shape: f32[128,128], index: 2, kind: input, shape index: {}]   ;;  %s474_s3 = inlined_call_operand.hbm [shape: f32[8,128], index: 3, kind: input, shape index: {}]   ;;  %s475_s4 = inlined_call_operand.hbm [shape: f32[1,8], index: 4, kind: output, shape index: {}]  }
   0x1   :  { %10 = vsyncpa [#allocation6], 0 }
   0x2   :  { %11 = vsyncpa [#allocation9], 0  ;;  %s28_s17 = sshll.u32 %s472_s1, 4  ;;  %s29_s17 = int_to_ptr.hbm [resolvable:$true] %s28_s17 }
   0x3   :  { %12 = vsyncpa [#allocation4], 0  ;;  %s423_s18 = smov [#allocation5]   ;;  %s18_s22 = sshll.u32 %s471_s0, 4  ;;  %s19_s22 = int_to_ptr.hbm [resolvable:$true] %s18_s22 }
   0x4   :  { %s30_s19 = sshll.u32 %s423_s18, 4  ;;  %s424_s23 = smov 128   ;;  %s31_s19 = int_to_ptr.vmem [resolvable:$true] %s30_s19 }
   0x5   :  { %s425_s24 = smov 8   ;;  %s426_s25 = smov [#allocation2]  }
   0x6   :  { %36 = dma.hbm_to_vmem [thread:$0]  %s29_s17, 512, %s31_s19, [#allocation6], %s424_s23, %s424_s23, %s425_s24  }
   0x7   :  { %s20_s26 = sshll.u32 %s426_s25, 4  ;;  %s41_s29 = sshll.u32 %s473_s2, 4  ;;  %s21_s26 = int_to_ptr.vmem [resolvable:$true] %s20_s26  ;;  %s42_s29 = int_to_ptr.hbm [resolvable:$true] %s41_s29 }
   0x8   :  { %23 = dma.hbm_to_vmem [thread:$0]  %s19_s22, 128, %s21_s26, [#allocation3]  }
   0x9   :  { %s55_s5 = sshll.u32 %s474_s3, 4  ;;  %s427_s6 = smov [#allocation7]   ;;  %s56_s5 = int_to_ptr.hbm [resolvable:$true] %s55_s5 }
   0xa   :  { %s43_s7 = sshll.u32 %s427_s6, 4  ;;  %s428_s0 = smov [#allocation8]   ;;  %s44_s7 = int_to_ptr.vmem [resolvable:$true] %s43_s7 }
   0xb   :  { %49 = dma.hbm_to_vmem [thread:$0]  %s42_s29, 2048, %s44_s7, [#allocation6], %s424_s23, %s424_s23, %s425_s24  }
   0xc   :  { %s57_s8 = sshll.u32 %s428_s0, 4  ;;  %s58_s8 = int_to_ptr.vmem [resolvable:$true] %s57_s8 }
   0xd   :  { %60 = dma.hbm_to_vmem [thread:$0]  %s56_s5, 128, %s58_s8, [#allocation9]  }
   0xe   :  { %415 = dma.done.wait [#allocation3], 128  }
   0xf   :  { %416 = vsyncadd [#allocation3], 4294967168 }
  0x10   :  { %417 = dma.done.wait [#allocation6], 2560  }
  0x11   :  { %418 = vsyncadd [#allocation6], 4294964736 }
  0x12   :  { %419 = dma.done.wait [#allocation9], 128  }
  0x13   :  { %420 = vsyncadd [#allocation9], 4294967168  ;;  %v82_v0 = vld [vmem:[#allocation5 + $0x18] sm:$0xff]  ;;  %v81_v1 = vld [vmem:[#allocation5 + $0x10] sm:$0xff]  ;;  %vm83_vm0 = vcmask 261120   ;;  %s430_s2 = smov [#allocation10]  }
  0x14   :  { %99 = vmatpush.msra.mxu0 %v82_v0  ;;  %v80_v2 = vld [vmem:[#allocation5 + $0x8] sm:$0xff]  ;;  %v79_v3 = vld [vmem:[#allocation5] sm:$0xff]  ;;  %v77_v4 = vld [vmem:[#allocation2] sm:$0xff]  ;;  %s263_s3 = sshll.u32 %s430_s2, 4  ;;  %s265_s11 = sshll.u32 %s475_s4, 4  ;;  %vm256_vm7 = vcmask 57344   ;;  %s264_s3 = int_to_ptr.vmem [resolvable:$true] %s263_s3  ;;  %s266_s11 = int_to_ptr.hbm [resolvable:$true] %s265_s11 }
  0x15   :  { %v162_v5 = vld [vmem:[#allocation7 + $0x78] sm:$0xff]  ;;  %v161_v6 = vld [vmem:[#allocation7 + $0x70] sm:$0xff]  ;;  %v160_v7 = vld [vmem:[#allocation7 + $0x68] sm:$0xff] }
  0x16   :  { %100 = vmatpush.msra.mxu0 %v81_v1  ;;  %163 = vmatpush.msra.mxu1 %v162_v5  ;;  %v159_v8 = vld [vmem:[#allocation7 + $0x60] sm:$0xff]  ;;  %v158_v9 = vld [vmem:[#allocation7 + $0x58] sm:$0xff]  ;;  %v157_v13 = vld [vmem:[#allocation7 + $0x50] sm:$0xff] }
  0x17   :  { %v156_v16 = vld [vmem:[#allocation7 + $0x48] sm:$0xff]  ;;  %v155_v19 = vld [vmem:[#allocation7 + $0x40] sm:$0xff]  ;;  %v154_v22 = vld [vmem:[#allocation7 + $0x38] sm:$0xff] }
  0x18   :  { %101 = vmatpush.msra.mxu0 %v80_v2  ;;  %164 = vmatpush.msra.mxu1 %v161_v6  ;;  %v153_v25 = vld [vmem:[#allocation7 + $0x30] sm:$0xff]  ;;  %v152_v28 = vld [vmem:[#allocation7 + $0x28] sm:$0xff]  ;;  %v151_v31 = vld [vmem:[#allocation7 + $0x20] sm:$0xff] }
  0x19   :  { %v150_v32 = vld [vmem:[#allocation7 + $0x18] sm:$0xff]  ;;  %v149_v35 = vld [vmem:[#allocation7 + $0x10] sm:$0xff]  ;;  %v148_v37 = vld [vmem:[#allocation7 + $0x8] sm:$0xff] }
  0x1a   :  { %102 = vmatpush.msra.mxu0 %v79_v3  ;;  %165 = vmatpush.msra.mxu1 %v160_v7  ;;  %v147_v39 = vld [vmem:[#allocation7] sm:$0xff] }
  0x1b   :  { %277 = vmatmul.msk.f32.vlgmr.msra.gmra.mxu0 %vm83_vm0, %v77_v4  ;;  %v78_v46 = vld [vmem:[#allocation8] sm:$0xff] }
  0x1c   :  { %166 = vmatpush.msra.mxu1 %v159_v8 }
  0x1e   :  { %167 = vmatpush.msra.mxu1 %v158_v9 }
  0x20   :  { %168 = vmatpush.msra.mxu1 %v157_v13 }
  0x22   :  { %169 = vmatpush.msra.mxu1 %v156_v16 }
  0x24   :  { %170 = vmatpush.msra.mxu1 %v155_v19 }
  0x26   :  { %171 = vmatpush.msra.mxu1 %v154_v22 }
  0x28   :  { %172 = vmatpush.msra.mxu1 %v153_v25 }
  0x2a   :  { %173 = vmatpush.msra.mxu1 %v152_v28 }
  0x2c   :  { %174 = vmatpush.msra.mxu1 %v151_v31  ;;  %v227_v31 = vrot.slane %v78_v46, 4 }
  0x2e   :  { %175 = vmatpush.msra.mxu1 %v150_v32 }
  0x30   :  { %176 = vmatpush.msra.mxu1 %v149_v35 }
  0x32   :  { %177 = vmatpush.msra.mxu1 %v148_v37 }
  0x34   :  { %178 = vmatpush.msra.mxu1 %v147_v39 }
  0x98   :  { %v104_v10 = vpop.f32.mrf.mxu0 }
  0x99   :  { %v107_v11 = vrot.slane %v104_v10, 4  ;;  %v113_v12 = vmul.f32 %v104_v10, %v104_v10 }
  0x9b   :  { %v108_v14 = vadd.f32 %v107_v11, %v104_v10  ;;  %v114_v15 = vrot.slane %v113_v12, 4 }
  0x9d   :  { %v109_v17 = vrot.slane %v108_v14, 2  ;;  %v115_v18 = vadd.f32 %v114_v15, %v113_v12 }
  0x9f   :  { %v110_v20 = vadd.f32 %v109_v17, %v108_v14  ;;  %v116_v21 = vrot.slane %v115_v18, 2  ;;  %v429_v14 = vmov 0  }
  0xa0   :  { %286 = vset.pattern.permute.xlu0 %v429_v14 }
  0xa1   :  { %v111_v23 = vrot.slane %v110_v20, 1  ;;  %v117_v24 = vadd.f32 %v116_v21, %v115_v18  ;;  %225 = vperm.xlu0 %286, %v78_v46  }
  0xa3   :  { %v112_v26 = vadd.f32 %v111_v23, %v110_v20  ;;  %v118_v27 = vrot.slane %v117_v24, 1 }
  0xa5   :  { %v119_v29 = vadd.f32 %v118_v27, %v117_v24  ;;  %v120_v30 = vmul.f32 0.125, %v112_v26 }
  0xa7   :  { %v121_v33 = vmul.f32 0.125, %v119_v29  ;;  %v122_v34 = vmul.f32 %v120_v30, %v120_v30 }
  0xa9   :  { %v123_v36 = vsub.f32 %v121_v33, %v122_v34 }
  0xab   :  { %v124_v38 = vmax.f32 %v123_v36, 0.0 }
  0xad   :  { %v125_v40 = vadd.f32 1e-05, %v124_v38 }
  0xaf   :  { %287 = vrsqrt.f32 %v125_v40  ;;  %vm132_vm2 = vweird.f32 %v125_v40 }
  0xb5   :  { %v288_v41 = vpop.eup %287 }
  0xb6   :  { %v127_v42 = vmul.f32 %v288_v41, %v125_v40  ;;  %vm133_vm1 = vweird.f32 %v288_v41 }
  0xb7   :  { %vm134_vm3 = vmor %vm132_vm2, %vm133_vm1 }
  0xb8   :  { %v128_v43 = vmul.f32 %v288_v41, %v127_v42 }
  0xba   :  { %v129_v44 = vmul.f32 0.5, %v128_v43 }
  0xbc   :  { %v130_v45 = vsub.f32 1.5, %v129_v44 }
  0xbe   :  { %v131_v47 = vmul.f32 %v288_v41, %v130_v45 }
  0xc0   :  { %v135_v48 = vsel %vm134_vm3, %v288_v41, %v131_v47 }
  0xc1   :  { %v136_v49 = vmul.f32 %v135_v48, %v78_v46 }
  0xc3   :  { %v137_v50 = vmul.f32 %v136_v49, %v120_v30  ;;  %v142_v51 = vperm.slane %v136_v49, 0 }
  0xc5   :  { %v139_v52 = vrot.slane %v137_v50, 7  ;;  %v143_v54 = vmul.f32 %v142_v51, %v104_v10 }
  0xc7   :  { %v141_v53 = vsub.f32 %v78_v46, %v139_v52 }
  0xc9   :  { %v144_v55 = vperm.slane %v141_v53, 1 }
  0xcb   :  { %v145_v56 = vadd.f32 %v144_v55, %v143_v54 }
  0xcd   :  { %v146_v57 = vmax.f32 %v145_v56, 0.0 }
  0xcf   :  { %179 = vmatmul.f32.vlgmr.msra.gmra.mxu1 %v146_v57 }
 0x113   :  { %v226_v32 = vpop.permute.xlu0 %225 }
 0x114   :  { %v229_v33 = vrot.slane %v226_v32, 5 }
 0x14c   :  { %v180_v58 = vpop.f32.mrf.mxu1 }
 0x14d   :  { %v183_v59 = vrot.slane %v180_v58, 4  ;;  %v189_v60 = vmul.f32 %v180_v58, %v180_v58 }
 0x14f   :  { %v184_v61 = vadd.f32 %v183_v59, %v180_v58  ;;  %v190_v62 = vrot.slane %v189_v60, 4 }
 0x151   :  { %v185_v63 = vrot.slane %v184_v61, 2  ;;  %v191_v0 = vadd.f32 %v190_v62, %v189_v60 }
 0x153   :  { %v186_v1 = vadd.f32 %v185_v63, %v184_v61  ;;  %v192_v2 = vrot.slane %v191_v0, 2 }
 0x155   :  { %v187_v3 = vrot.slane %v186_v1, 1  ;;  %v193_v4 = vadd.f32 %v192_v2, %v191_v0 }
 0x157   :  { %v188_v5 = vadd.f32 %v187_v3, %v186_v1  ;;  %v194_v6 = vrot.slane %v193_v4, 1 }
 0x159   :  { %v195_v7 = vadd.f32 %v194_v6, %v193_v4  ;;  %v196_v8 = vmul.f32 0.125, %v188_v5 }
 0x15b   :  { %v197_v9 = vmul.f32 0.125, %v195_v7  ;;  %v198_v10 = vmul.f32 %v196_v8, %v196_v8 }
 0x15d   :  { %v199_v11 = vsub.f32 %v197_v9, %v198_v10 }
 0x15f   :  { %v200_v12 = vmax.f32 %v199_v11, 0.0 }
 0x161   :  { %v201_v13 = vadd.f32 1e-05, %v200_v12 }
 0x163   :  { %289 = vrsqrt.f32 %v201_v13  ;;  %vm208_vm5 = vweird.f32 %v201_v13 }
 0x169   :  { %v290_v15 = vpop.eup %289 }
 0x16a   :  { %v203_v16 = vmul.f32 %v290_v15, %v201_v13  ;;  %vm209_vm4 = vweird.f32 %v290_v15 }
 0x16b   :  { %vm210_vm6 = vmor %vm208_vm5, %vm209_vm4 }
 0x16c   :  { %v204_v17 = vmul.f32 %v290_v15, %v203_v16 }
 0x16e   :  { %v205_v18 = vmul.f32 0.5, %v204_v17 }
 0x170   :  { %v206_v19 = vsub.f32 1.5, %v205_v18 }
 0x172   :  { %v207_v20 = vmul.f32 %v290_v15, %v206_v19 }
 0x174   :  { %v211_v21 = vsel %vm210_vm6, %v290_v15, %v207_v20 }
 0x175   :  { %v212_v22 = vmul.f32 %v211_v21, %v78_v46 }
 0x177   :  { %v213_v23 = vmul.f32 %v212_v22, %v196_v8  ;;  %v218_v25 = vperm.slane %v212_v22, 2 }
 0x179   :  { %v215_v24 = vrot.slane %v213_v23, 7  ;;  %v219_v27 = vmul.f32 %v218_v25, %v180_v58 }
 0x17b   :  { %v217_v26 = vsub.f32 %v78_v46, %v215_v24 }
 0x17d   :  { %v220_v28 = vperm.slane %v217_v26, 3 }
 0x17f   :  { %v221_v29 = vadd.f32 %v220_v28, %v219_v27 }
 0x181   :  { %v222_v30 = vmax.f32 %v221_v29, 0.0 }
 0x183   :  { %246 = vmatpush.xpose.msra.mxu2 %v222_v30 }
 0x186   :  { %247 = vmatmul.f32.vlgmr.msra.gmra.mxu2 %v227_v31 }
 0x209   :  { %v248_v34 = vpop.f32.mrf.mxu2 }
 0x20a   :  { %v249_v35 = vadd.f32 %v248_v34, %v229_v33 }
 0x20c   :  { %v251_v36 = vsub.f32 0.0, %v249_v35 }
 0x20e   :  { %v252_v37 = vmul.f32 1.442695, %v251_v36 }
 0x210   :  { %291 = vpow2.f32 %v252_v37 }
 0x216   :  { %v292_v38 = vpop.eup %291 }
 0x217   :  { %v254_v39 = vadd.f32 1.0, %v292_v38 }
 0x219   :  { %293 = vrcp.f32 %v254_v39 }
 0x21f   :  { %v294_v40 = vpop.eup %293 }
 0x220   :  { %257 = vst.msk [vmem:[#allocation10] sm:$0x1] %vm256_vm7, %v294_v40 }
 0x221   :  { %268 = dma.vmem_to_hbm [thread:$0]  %s264_s3, 16, %s266_s11, [#allocation4]  }
 0x222   :  { %421 = dma.done.wait [#allocation4], 16  }
 0x223   :  { %422 = vsyncadd [#allocation4], 4294967280 }
 0x224   :  { %273 = vsyncpa [#allocation3], 1 }
 0x225   :  { %274 = vsyncpa [#allocation6], 1 }
 0x226   :  { %275 = vsyncpa [#allocation9], 1 }
 0x227   :  { %276 = vsyncpa [#allocation4], 1 }

</bundles_post_ra>
